<compile_context>
chip_gen: v7x
topology: tpu7x:2x2x1
jax: 0.10.0
libtpu: 0.0.40
codegen_flags: <defaults>
</compile_context>

<pallas_src>
import jax
import jax.numpy as jnp
from jax import lax
from jax.experimental import pallas as pl
from jax.experimental.pallas import tpu as pltpu

LANES = 128


# ---------------------------------------------------------------------------
# Planar (SoA) layout helpers
# ---------------------------------------------------------------------------
def _plane_dims(n, max_rows):
    """rows_pad (multiple of tile rows), tile rows; lanes fixed at 128."""
    rows = -(-n // LANES)                    # ceil(n / 128)
    rows = ((rows + 7) // 8) * 8             # sublane multiple
    tr = min(max_rows, rows)                 # both multiples of 8
    rows_pad = -(-rows // tr) * tr
    return rows_pad, tr


def _pack_planes(x2d, rows_pad):
    """[N, C] -> (C, rows_pad, 128) channel planes, zero padded."""
    n, c = x2d.shape
    total = rows_pad * LANES
    xt = jnp.transpose(x2d)                  # (C, N)
    xt = jnp.pad(xt, ((0, 0), (0, total - n)))
    return xt.reshape(c, rows_pad, LANES)


# ---------------------------------------------------------------------------
# Kernel 1 (fused): vertex clip transform + vertex-normal finalize
#   inputs : mvp (16 SMEM scalars), packed planes [vx,vy,vz, anx,any,anz]
#   outputs: packed planes [cx,cy,cz,cw, nx,ny,nz]
# ---------------------------------------------------------------------------
def _vertex_kernel(mvp_ref, vin_ref, vout_ref):
    vx = vin_ref[0]
    vy = vin_ref[1]
    vz = vin_ref[2]

    # vertices_clip[:, j] = vx*mvp[j,0] + vy*mvp[j,1] + vz*mvp[j,2] + mvp[j,3]
    vout_ref[0] = mvp_ref[0] * vx + mvp_ref[1] * vy + mvp_ref[2] * vz + mvp_ref[3]
    vout_ref[1] = mvp_ref[4] * vx + mvp_ref[5] * vy + mvp_ref[6] * vz + mvp_ref[7]
    vout_ref[2] = mvp_ref[8] * vx + mvp_ref[9] * vy + mvp_ref[10] * vz + mvp_ref[11]
    vout_ref[3] = mvp_ref[12] * vx + mvp_ref[13] * vy + mvp_ref[14] * vz + mvp_ref[15]

    # vertex-normal finalize: where(||vn||^2 > eps, vn, [0,0,1]); safe_normalize
    ax = vin_ref[3]
    ay = vin_ref[4]
    az = vin_ref[5]
    ss = ax * ax + ay * ay + az * az
    use = ss > 1e-20
    nx = jnp.where(use, ax, 0.0)
    ny = jnp.where(use, ay, 0.0)
    nz = jnp.where(use, az, 1.0)
    inv_norm = lax.rsqrt(jnp.maximum(nx * nx + ny * ny + nz * nz, 1e-20))
    vout_ref[4] = nx * inv_norm
    vout_ref[5] = ny * inv_norm
    vout_ref[6] = nz * inv_norm


def vertex_pipeline(verts, vn_raw, mvp, max_rows=512):
    V = verts.shape[0]
    rows_pad, tr = _plane_dims(V, max_rows)
    vin = _pack_planes(jnp.concatenate([verts, vn_raw], axis=1), rows_pad)  # (6,R,128)
    mvp_flat = mvp.reshape(-1).astype(jnp.float32)                           # (16,)
    grid = rows_pad // tr

    vout = pl.pallas_call(
        _vertex_kernel,
        out_shape=jax.ShapeDtypeStruct((7, rows_pad, LANES), jnp.float32),
        grid_spec=pltpu.PrefetchScalarGridSpec(
            num_scalar_prefetch=0, grid=(grid,),
            in_specs=[pl.BlockSpec(memory_space=pltpu.MemorySpace.SMEM),   # mvp scalars
                      pl.BlockSpec((6, tr, LANES), lambda i: (0, i, 0))],
            out_specs=pl.BlockSpec((7, tr, LANES), lambda i: (0, i, 0))),
        compiler_params=pltpu.CompilerParams(
            dimension_semantics=("parallel",)),
    )(mvp_flat, vin)

    flat = vout.reshape(7, -1)[:, :V]
    vertices_clip = jnp.transpose(flat[0:4])      # [V, 4]
    verts_normal = jnp.transpose(flat[4:7])       # [V, 3]
    return vertices_clip, verts_normal


# ---------------------------------------------------------------------------
# Kernel 2: per-pixel pipeline of mask_mesh (channel-planar)
#   params (SMEM, 10 scalars): inv(c2w[:3,:3]) row-major (9) + cos_thres (1)
#   input planes : [nx, ny, nz, mask, mask_full]
#   output planes: [mask_aa_save, normal_mask, mask_aa_and_normal, gbx, gby, gbz]
# ---------------------------------------------------------------------------
def _pixel_kernel(prm_ref, pin_ref, pout_ref):
    i00 = prm_ref[0]; i01 = prm_ref[1]; i02 = prm_ref[2]
    i10 = prm_ref[3]; i11 = prm_ref[4]; i12 = prm_ref[5]
    i20 = prm_ref[6]; i21 = prm_ref[7]; i22 = prm_ref[8]
    cos_thres = prm_ref[9]

    nx = pin_ref[0]
    ny = pin_ref[1]
    nz = pin_ref[2]
    m = pin_ref[3]
    mf = pin_ref[4]

    # mask_aa_save[mask_aa_save > 0] = 1
    maa = jnp.where(m > 0.0, 1.0, m)
    pout_ref[0] = maa

    # camera-space normal: inv @ n (per pixel), via scalar x vreg FMAs
    cx = i00 * nx + i01 * ny + i02 * nz
    cy = i10 * nx + i11 * ny + i12 * nz
    cz = i20 * nx + i21 * ny + i22 * nz

    # normal[normal < cos_thres] = 0 ; normal_mask[normal_mask > 0] = 1
    cz_thr = jnp.where(cz < cos_thres, 0.0, cz)
    nmask = jnp.where(cz_thr > 0.0, 1.0, cz_thr)
    pout_ref[1] = nmask

    # torch.logical_and(mask_aa_save, normal_mask) emitted as float 0/1
    pout_ref[2] = jnp.where(
        jnp.logical_and(maa != 0.0, nmask != 0.0), 1.0, 0.0)

    # gb_normal = where(z < 0, -n, n); F.normalize(dim=-1); lerp(1, (n+1)/2, mf)
    neg = cz < 0.0
    gx = jnp.where(neg, -cx, cx)
    gy = jnp.where(neg, -cy, cy)
    gz = jnp.where(neg, -cz, cz)
    inv_norm = lax.rsqrt(jnp.maximum(gx * gx + gy * gy + gz * gz, 1e-24))
    gx = gx * inv_norm
    gy = gy * inv_norm
    gz = gz * inv_norm
    pout_ref[3] = 1.0 + mf * ((gx + 1.0) * 0.5 - 1.0)
    pout_ref[4] = 1.0 + mf * ((gy + 1.0) * 0.5 - 1.0)
    pout_ref[5] = 1.0 + mf * ((gz + 1.0) * 0.5 - 1.0)


def pixel_pipeline(normal_pix, mask, mask_full, params, H, W, max_rows=1024):
    P = normal_pix.shape[0]
    rows_pad, tr = _plane_dims(P, max_rows)
    feats = jnp.concatenate([normal_pix, mask, mask_full], axis=1)   # [P, 5]
    pin = _pack_planes(feats, rows_pad)                              # (5, R, 128)
    grid = rows_pad // tr

    pout = pl.pallas_call(
        _pixel_kernel,
        out_shape=jax.ShapeDtypeStruct((6, rows_pad, LANES), jnp.float32),
        grid_spec=pltpu.PrefetchScalarGridSpec(
            num_scalar_prefetch=0, grid=(grid,),
            in_specs=[pl.BlockSpec(memory_space=pltpu.MemorySpace.SMEM),  # params
                      pl.BlockSpec((5, tr, LANES), lambda i: (0, i, 0))],
            out_specs=pl.BlockSpec((6, tr, LANES), lambda i: (0, i, 0))),
        compiler_params=pltpu.CompilerParams(
            dimension_semantics=("parallel",)),
    )(params, pin)

    flat = pout.reshape(6, -1)[:, :P]
    mask_aa_save = flat[0].reshape(H, W, 1)
    normal_mask = flat[1].reshape(H, W, 1)
    mask_aa_and_normal = flat[2].reshape(H, W, 1)
    gb_normal_aa = jnp.transpose(flat[3:6]).reshape(H, W, 3)
    return mask_aa_save, normal_mask, mask_aa_and_normal, gb_normal_aa


# ---------------------------------------------------------------------------
# Synthetic stand-in for dr.rasterize / dr.interpolate (plain-JAX glue)
# ---------------------------------------------------------------------------
def synth_rast(P, num_faces):
    idxs = jnp.arange(P)
    tri_id = idxs % num_faces
    u = ((idxs * 37) % 97).astype(jnp.float32) / 300.0
    v = ((idxs * 59) % 89).astype(jnp.float32) / 300.0
    w = 1.0 - u - v
    bary = jnp.stack([u, v, w], axis=1)                    # [P, 3]
    covered = (idxs % 5 != 0).astype(jnp.float32)          # some bg pixels -> 0
    return tri_id, bary, covered


def interpolate(attr, faces, tri_id, bary, covered):
    f = faces[tri_id]                                      # [P, 3]
    a = attr[f]                                            # [P, 3, C]
    out = jnp.sum(bary[:, :, None] * a, axis=1)            # [P, C]
    return out * covered[:, None]                          # bg pixels -> 0


# ---------------------------------------------------------------------------
# mask_mesh forward-path wrapper (core compute of TexturedMeshModel.mask_mesh)
# ---------------------------------------------------------------------------
def mask_mesh(verts, faces, mvp, c2w, H, W, idx, verts_mask=None,
              render_angle_thres=75.0, render_angle_thres_later=68.0,
              use_normal_mask=True, vert_rows=512, pix_rows=1024):
    V = verts.shape[0]
    P = H * W

    reuse_mask = verts_mask is None
    if reuse_mask:
        # verts_mask is None path: ones_like(verts[:, :1])
        verts_mask = jnp.ones((V, 1), jnp.float32)

    # compute_normal accumulation as ONE fused scatter-add (JAX glue);
    # the where-default + safe_normalize finalize runs inside the vertex kernel.
    i0, i1, i2 = faces[:, 0], faces[:, 1], faces[:, 2]
    v0, v1, v2 = verts[i0], verts[i1], verts[i2]
    face_normals = jnp.cross(v1 - v0, v2 - v0)
    idx_all = jnp.concatenate([i0, i1, i2])
    fn_all = jnp.concatenate([face_normals, face_normals, face_normals])
    vn_raw = jnp.zeros_like(verts).at[idx_all].add(fn_all)

    # fused Pallas kernel: clip transform + normal finalize
    vertices_clip, verts_normal = vertex_pipeline(verts, vn_raw, mvp, vert_rows)

    # TODO(synk): dr.rasterize / dr.antialias (CUDA rasterizer) have no Pallas
    # equivalent; deterministic synthetic rasterization stands in.
    tri_id, bary, covered = synth_rast(P, faces.shape[0])

    normal_pix = interpolate(verts_normal, faces, tri_id, bary, covered)    # [P,3]
    mask_full = interpolate(jnp.ones((V, 1), jnp.float32), faces,
                            tri_id, bary, covered)                          # [P,1]
    # verts_mask == ones  =>  mask is identical to mask_full; skip the 2nd interp
    mask = mask_full if reuse_mask else interpolate(
        verts_mask, faces, tri_id, bary, covered)                           # [P,1]

    c2w_inv = jnp.linalg.inv(c2w[:3, :3])
    thres = jnp.where(jnp.asarray(idx) < 8,
                      jnp.float32(render_angle_thres),
                      jnp.float32(render_angle_thres_later))
    cos_thres = jnp.cos(thres / 180.0 * jnp.pi)
    params = jnp.concatenate(
        [c2w_inv.reshape(-1), cos_thres.reshape(1)]).astype(jnp.float32)    # (10,)

    mask_aa_save, normal_mask, mask_aa_and_normal, gb_normal_aa = pixel_pipeline(
        normal_pix, mask, mask_full, params, H, W, pix_rows)

    if not use_normal_mask:
        mask_aa_and_normal = mask_aa_save

    return {
        "mask_aa_save": mask_aa_save,
        "normal_mask": normal_mask,
        "mask_aa_and_normal": mask_aa_and_normal,
        "gb_normal_aa": gb_normal_aa,
        "verts_mask": verts_mask,
        "vertices_clip": vertices_clip,
    }


if __name__ == "__main__":
    key = jax.random.PRNGKey(0)
    k1, k2, k3, k4 = jax.random.split(key, 4)

    V, Fc, H, W = 64, 120, 16, 16
    verts = jax.random.normal(k1, (V, 3), jnp.float32)
    faces = jax.random.randint(k2, (Fc, 3), 0, V, jnp.int32)

    # deterministic camera: orthonormal rotation (QR) + translation; mvp ~ I + noise
    R, _ = jnp.linalg.qr(jax.random.normal(k3, (3, 3), jnp.float32))
    c2w = jnp.concatenate(
        [jnp.concatenate([R, jnp.array([[0.0], [0.0], [3.0]], jnp.float32)], axis=1),
         jnp.array([[0.0, 0.0, 0.0, 1.0]], jnp.float32)], axis=0)
    mvp = jnp.eye(4, dtype=jnp.float32) + 0.1 * jax.random.normal(k4, (4, 4), jnp.float32)

    outs = mask_mesh(verts, faces, mvp, c2w, H, W, idx=0)
    jax.block_until_ready(outs)
    print("KERNEL_OK")
</pallas_src>

<mosaic_0001>
module attributes {stable_mosaic.version = 11 : i64} {
  func.func @_vertex_kernel(%arg0: i32, %arg1: memref<16xf32, #tpu.memory_space<smem>>, %arg2: memref<6x8x128xf32, #tpu.memory_space<vmem>>, %arg3: memref<7x8x128xf32, #tpu.memory_space<vmem>>) attributes {dimension_semantics = [#tpu.dimension_semantics<parallel>], iteration_bounds = array<i64: 1>, scalar_prefetch = 0 : i64, scratch_operands = 0 : i64, tpu.core_type = #tpu.core_type<tc>, window_params = [{transform_indices = @transform_0, window_bounds = array<i64: 16>}, {transform_indices = @transform_1, window_bounds = array<i64: 6, 8, 128>}, {transform_indices = @transform_2, window_bounds = array<i64: 7, 8, 128>}]} {
    %c0 = arith.constant 0 : index
    %c0_0 = arith.constant 0 : index
    %c0_1 = arith.constant 0 : index
    %0 = vector.load %arg2[%c0, %c0_0, %c0_1] : memref<6x8x128xf32, #tpu.memory_space<vmem>>, vector<1x8x128xf32>
    %1 = vector.shape_cast %0 : vector<1x8x128xf32> to vector<8x128xf32>
    %c1 = arith.constant 1 : index
    %c0_2 = arith.constant 0 : index
    %c0_3 = arith.constant 0 : index
    %2 = vector.load %arg2[%c1, %c0_2, %c0_3] : memref<6x8x128xf32, #tpu.memory_space<vmem>>, vector<1x8x128xf32>
    %3 = vector.shape_cast %2 : vector<1x8x128xf32> to vector<8x128xf32>
    %c2 = arith.constant 2 : index
    %c0_4 = arith.constant 0 : index
    %c0_5 = arith.constant 0 : index
    %4 = vector.load %arg2[%c2, %c0_4, %c0_5] : memref<6x8x128xf32, #tpu.memory_space<vmem>>, vector<1x8x128xf32>
    %5 = vector.shape_cast %4 : vector<1x8x128xf32> to vector<8x128xf32>
    %c0_6 = arith.constant 0 : index
    %6 = memref.load %arg1[%c0_6] : memref<16xf32, #tpu.memory_space<smem>>
    %7 = vector.broadcast %6 : f32 to vector<8x128xf32>
    %8 = arith.mulf %7, %1 : vector<8x128xf32>
    %c1_7 = arith.constant 1 : index
    %9 = memref.load %arg1[%c1_7] : memref<16xf32, #tpu.memory_space<smem>>
    %10 = vector.broadcast %9 : f32 to vector<8x128xf32>
    %11 = arith.mulf %10, %3 : vector<8x128xf32>
    %12 = arith.addf %8, %11 : vector<8x128xf32>
    %c2_8 = arith.constant 2 : index
    %13 = memref.load %arg1[%c2_8] : memref<16xf32, #tpu.memory_space<smem>>
    %14 = vector.broadcast %13 : f32 to vector<8x128xf32>
    %15 = arith.mulf %14, %5 : vector<8x128xf32>
    %16 = arith.addf %12, %15 : vector<8x128xf32>
    %c3 = arith.constant 3 : index
    %17 = memref.load %arg1[%c3] : memref<16xf32, #tpu.memory_space<smem>>
    %18 = vector.broadcast %17 : f32 to vector<8x128xf32>
    %19 = arith.addf %16, %18 : vector<8x128xf32>
    %c0_9 = arith.constant 0 : index
    %c0_10 = arith.constant 0 : index
    %c0_11 = arith.constant 0 : index
    %20 = vector.load %arg3[%c0_9, %c0_10, %c0_11] : memref<7x8x128xf32, #tpu.memory_space<vmem>>, vector<1x8x128xf32>
    %21 = vector.shape_cast %20 : vector<1x8x128xf32> to vector<8x128xf32>
    %22 = vector.shape_cast %19 : vector<8x128xf32> to vector<1x8x128xf32>
    tpu.vector_store %arg3[%c0_9, %c0_10, %c0_11], %22 {strides = array<i32>} : memref<7x8x128xf32, #tpu.memory_space<vmem>>, vector<1x8x128xf32>,
    %c4 = arith.constant 4 : index
    %23 = memref.load %arg1[%c4] : memref<16xf32, #tpu.memory_space<smem>>
    %24 = vector.broadcast %23 : f32 to vector<8x128xf32>
    %25 = arith.mulf %24, %1 : vector<8x128xf32>
    %c5 = arith.constant 5 : index
    %26 = memref.load %arg1[%c5] : memref<16xf32, #tpu.memory_space<smem>>
    %27 = vector.broadcast %26 : f32 to vector<8x128xf32>
    %28 = arith.mulf %27, %3 : vector<8x128xf32>
    %29 = arith.addf %25, %28 : vector<8x128xf32>
    %c6 = arith.constant 6 : index
    %30 = memref.load %arg1[%c6] : memref<16xf32, #tpu.memory_space<smem>>
    %31 = vector.broadcast %30 : f32 to vector<8x128xf32>
    %32 = arith.mulf %31, %5 : vector<8x128xf32>
    %33 = arith.addf %29, %32 : vector<8x128xf32>
    %c7 = arith.constant 7 : index
    %34 = memref.load %arg1[%c7] : memref<16xf32, #tpu.memory_space<smem>>
    %35 = vector.broadcast %34 : f32 to vector<8x128xf32>
    %36 = arith.addf %33, %35 : vector<8x128xf32>
    %c1_12 = arith.constant 1 : index
    %c0_13 = arith.constant 0 : index
    %c0_14 = arith.constant 0 : index
    %37 = vector.load %arg3[%c1_12, %c0_13, %c0_14] : memref<7x8x128xf32, #tpu.memory_space<vmem>>, vector<1x8x128xf32>
    %38 = vector.shape_cast %37 : vector<1x8x128xf32> to vector<8x128xf32>
    %39 = vector.shape_cast %36 : vector<8x128xf32> to vector<1x8x128xf32>
    tpu.vector_store %arg3[%c1_12, %c0_13, %c0_14], %39 {strides = array<i32>} : memref<7x8x128xf32, #tpu.memory_space<vmem>>, vector<1x8x128xf32>,
    %c8 = arith.constant 8 : index
    %40 = memref.load %arg1[%c8] : memref<16xf32, #tpu.memory_space<smem>>
    %41 = vector.broadcast %40 : f32 to vector<8x128xf32>
    %42 = arith.mulf %41, %1 : vector<8x128xf32>
    %c9 = arith.constant 9 : index
    %43 = memref.load %arg1[%c9] : memref<16xf32, #tpu.memory_space<smem>>
    %44 = vector.broadcast %43 : f32 to vector<8x128xf32>
    %45 = arith.mulf %44, %3 : vector<8x128xf32>
    %46 = arith.addf %42, %45 : vector<8x128xf32>
    %c10 = arith.constant 10 : index
    %47 = memref.load %arg1[%c10] : memref<16xf32, #tpu.memory_space<smem>>
    %48 = vector.broadcast %47 : f32 to vector<8x128xf32>
    %49 = arith.mulf %48, %5 : vector<8x128xf32>
    %50 = arith.addf %46, %49 : vector<8x128xf32>
    %c11 = arith.constant 11 : index
    %51 = memref.load %arg1[%c11] : memref<16xf32, #tpu.memory_space<smem>>
    %52 = vector.broadcast %51 : f32 to vector<8x128xf32>
    %53 = arith.addf %50, %52 : vector<8x128xf32>
    %c2_15 = arith.constant 2 : index
    %c0_16 = arith.constant 0 : index
    %c0_17 = arith.constant 0 : index
    %54 = vector.load %arg3[%c2_15, %c0_16, %c0_17] : memref<7x8x128xf32, #tpu.memory_space<vmem>>, vector<1x8x128xf32>
    %55 = vector.shape_cast %54 : vector<1x8x128xf32> to vector<8x128xf32>
    %56 = vector.shape_cast %53 : vector<8x128xf32> to vector<1x8x128xf32>
    tpu.vector_store %arg3[%c2_15, %c0_16, %c0_17], %56 {strides = array<i32>} : memref<7x8x128xf32, #tpu.memory_space<vmem>>, vector<1x8x128xf32>,
    %c12 = arith.constant 12 : index
    %57 = memref.load %arg1[%c12] : memref<16xf32, #tpu.memory_space<smem>>
    %58 = vector.broadcast %57 : f32 to vector<8x128xf32>
    %59 = arith.mulf %58, %1 : vector<8x128xf32>
    %c13 = arith.constant 13 : index
    %60 = memref.load %arg1[%c13] : memref<16xf32, #tpu.memory_space<smem>>
    %61 = vector.broadcast %60 : f32 to vector<8x128xf32>
    %62 = arith.mulf %61, %3 : vector<8x128xf32>
    %63 = arith.addf %59, %62 : vector<8x128xf32>
    %c14 = arith.constant 14 : index
    %64 = memref.load %arg1[%c14] : memref<16xf32, #tpu.memory_space<smem>>
    %65 = vector.broadcast %64 : f32 to vector<8x128xf32>
    %66 = arith.mulf %65, %5 : vector<8x128xf32>
    %67 = arith.addf %63, %66 : vector<8x128xf32>
    %c15 = arith.constant 15 : index
    %68 = memref.load %arg1[%c15] : memref<16xf32, #tpu.memory_space<smem>>
    %69 = vector.broadcast %68 : f32 to vector<8x128xf32>
    %70 = arith.addf %67, %69 : vector<8x128xf32>
    %c3_18 = arith.constant 3 : index
    %c0_19 = arith.constant 0 : index
    %c0_20 = arith.constant 0 : index
    %71 = vector.load %arg3[%c3_18, %c0_19, %c0_20] : memref<7x8x128xf32, #tpu.memory_space<vmem>>, vector<1x8x128xf32>
    %72 = vector.shape_cast %71 : vector<1x8x128xf32> to vector<8x128xf32>
    %73 = vector.shape_cast %70 : vector<8x128xf32> to vector<1x8x128xf32>
    tpu.vector_store %arg3[%c3_18, %c0_19, %c0_20], %73 {strides = array<i32>} : memref<7x8x128xf32, #tpu.memory_space<vmem>>, vector<1x8x128xf32>,
    %c3_21 = arith.constant 3 : index
    %c0_22 = arith.constant 0 : index
    %c0_23 = arith.constant 0 : index
    %74 = vector.load %arg2[%c3_21, %c0_22, %c0_23] : memref<6x8x128xf32, #tpu.memory_space<vmem>>, vector<1x8x128xf32>
    %75 = vector.shape_cast %74 : vector<1x8x128xf32> to vector<8x128xf32>
    %c4_24 = arith.constant 4 : index
    %c0_25 = arith.constant 0 : index
    %c0_26 = arith.constant 0 : index
    %76 = vector.load %arg2[%c4_24, %c0_25, %c0_26] : memref<6x8x128xf32, #tpu.memory_space<vmem>>, vector<1x8x128xf32>
    %77 = vector.shape_cast %76 : vector<1x8x128xf32> to vector<8x128xf32>
    %c5_27 = arith.constant 5 : index
    %c0_28 = arith.constant 0 : index
    %c0_29 = arith.constant 0 : index
    %78 = vector.load %arg2[%c5_27, %c0_28, %c0_29] : memref<6x8x128xf32, #tpu.memory_space<vmem>>, vector<1x8x128xf32>
    %79 = vector.shape_cast %78 : vector<1x8x128xf32> to vector<8x128xf32>
    %80 = arith.mulf %75, %75 : vector<8x128xf32>
    %81 = arith.mulf %77, %77 : vector<8x128xf32>
    %82 = arith.addf %80, %81 : vector<8x128xf32>
    %83 = arith.mulf %79, %79 : vector<8x128xf32>
    %84 = arith.addf %82, %83 : vector<8x128xf32>
    %cst = arith.constant 9.99999968E-21 : f32
    %85 = vector.broadcast %cst : f32 to vector<8x128xf32>
    %86 = arith.cmpf ogt, %84, %85 : vector<8x128xf32>
    %cst_30 = arith.constant 0.000000e+00 : f32
    %87 = vector.broadcast %cst_30 : f32 to vector<8x128xf32>
    %88 = arith.select %86, %75, %87 : vector<8x128xi1>, vector<8x128xf32>
    %cst_31 = arith.constant 0.000000e+00 : f32
    %89 = vector.broadcast %cst_31 : f32 to vector<8x128xf32>
    %90 = arith.select %86, %77, %89 : vector<8x128xi1>, vector<8x128xf32>
    %cst_32 = arith.constant 1.000000e+00 : f32
    %91 = vector.broadcast %cst_32 : f32 to vector<8x128xf32>
    %92 = arith.select %86, %79, %91 : vector<8x128xi1>, vector<8x128xf32>
    %93 = arith.mulf %88, %88 : vector<8x128xf32>
    %94 = arith.mulf %90, %90 : vector<8x128xf32>
    %95 = arith.addf %93, %94 : vector<8x128xf32>
    %96 = arith.mulf %92, %92 : vector<8x128xf32>
    %97 = arith.addf %95, %96 : vector<8x128xf32>
    %cst_33 = arith.constant 9.99999968E-21 : f32
    %98 = vector.broadcast %cst_33 : f32 to vector<8x128xf32>
    %99 = arith.maximumf %97, %98 : vector<8x128xf32>
    %100 = math.rsqrt %99 : vector<8x128xf32>
    %101 = arith.mulf %88, %100 : vector<8x128xf32>
    %c4_34 = arith.constant 4 : index
    %c0_35 = arith.constant 0 : index
    %c0_36 = arith.constant 0 : index
    %102 = vector.load %arg3[%c4_34, %c0_35, %c0_36] : memref<7x8x128xf32, #tpu.memory_space<vmem>>, vector<1x8x128xf32>
    %103 = vector.shape_cast %102 : vector<1x8x128xf32> to vector<8x128xf32>
    %104 = vector.shape_cast %101 : vector<8x128xf32> to vector<1x8x128xf32>
    tpu.vector_store %arg3[%c4_34, %c0_35, %c0_36], %104 {strides = array<i32>} : memref<7x8x128xf32, #tpu.memory_space<vmem>>, vector<1x8x128xf32>,
    %105 = arith.mulf %90, %100 : vector<8x128xf32>
    %c5_37 = arith.constant 5 : index
    %c0_38 = arith.constant 0 : index
    %c0_39 = arith.constant 0 : index
    %106 = vector.load %arg3[%c5_37, %c0_38, %c0_39] : memref<7x8x128xf32, #tpu.memory_space<vmem>>, vector<1x8x128xf32>
    %107 = vector.shape_cast %106 : vector<1x8x128xf32> to vector<8x128xf32>
    %108 = vector.shape_cast %105 : vector<8x128xf32> to vector<1x8x128xf32>
    tpu.vector_store %arg3[%c5_37, %c0_38, %c0_39], %108 {strides = array<i32>} : memref<7x8x128xf32, #tpu.memory_space<vmem>>, vector<1x8x128xf32>,
    %109 = arith.mulf %92, %100 : vector<8x128xf32>
    %c6_40 = arith.constant 6 : index
    %c0_41 = arith.constant 0 : index
    %c0_42 = arith.constant 0 : index
    %110 = vector.load %arg3[%c6_40, %c0_41, %c0_42] : memref<7x8x128xf32, #tpu.memory_space<vmem>>, vector<1x8x128xf32>
    %111 = vector.shape_cast %110 : vector<1x8x128xf32> to vector<8x128xf32>
    %112 = vector.shape_cast %109 : vector<8x128xf32> to vector<1x8x128xf32>
    tpu.vector_store %arg3[%c6_40, %c0_41, %c0_42], %112 {strides = array<i32>} : memref<7x8x128xf32, #tpu.memory_space<vmem>>, vector<1x8x128xf32>,
    return
  }
  func.func @transform_0(%arg0: i32) -> i32 {
    %c0_i32 = arith.constant 0 : i32
    %c0_i32_0 = arith.constant 0 : i32
    return %c0_i32 : i32
  }
  func.func @transform_1(%arg0: i32) -> (i32, i32, i32) {
    %c0_i32 = arith.constant 0 : i32
    %c0_i32_0 = arith.constant 0 : i32
    %c0_i32_1 = arith.constant 0 : i32
    return %c0_i32, %arg0, %c0_i32_0 : i32, i32, i32
  }
  func.func @transform_2(%arg0: i32) -> (i32, i32, i32) {
    %c0_i32 = arith.constant 0 : i32
    %c0_i32_0 = arith.constant 0 : i32
    %c0_i32_1 = arith.constant 0 : i32
    return %c0_i32, %arg0, %c0_i32_0 : i32, i32, i32
  }
}

</mosaic_0001>

<bundles_post_ra>
// kernel: tpu_custom_call.1
= control target key start
LH: loop header
LB: loop body
LE: loop exit
PB: predicated region body
PF: predicated region fallthrough
CT: control target
= control target key end

     0   :  { %7 = vsyncpa [#allocation5], 0  ;;  %s325_s0 = inlined_call_operand.hbm [shape: f32[16], index: 0, kind: input, shape index: {}]   ;;  %s326_s1 = inlined_call_operand.hbm [shape: f32[6,8,128], index: 1, kind: input, shape index: {}]   ;;  %s327_s2 = inlined_call_operand.hbm [shape: f32[7,8,128], index: 2, kind: output, shape index: {}]  }
   0x1   :  { %8 = vsyncpa [#allocation3], 0 }
   0x2   :  { %9 = vsyncpa [#allocation4], 0  ;;  %s176_s11 = scalar_lea.hbm %s325_s0, 16 }
   0x3   :  { %p177_p0 = scmp.ne.s32.totalorder %s325_s0, %s176_s11  ;;  %p180_p1 = scmp.lt.u32.totalorder %s176_s11, %s325_s0 }
   0x5   :  { %p182_p2 = pnand %p180_p1, %p177_p0 }
   0x7   :  { %185 = shalt.err (!%p182_p2)
}
   0x8   :  { %s236_s16 = smov [#allocation2]   ;;  %s237_s19 = smov [#allocation6]  }
   0x9   :  { %17 = dma.hbm_to_smem %s325_s0, 16, %s236_s16, [#allocation5]  }
   0xa   :  { %s23_s20 = sshll.u32 %s237_s19, 4  ;;  %s186_s23 = scalar_lea.hbm %s326_s1, 768  ;;  %s24_s20 = int_to_ptr.vmem [resolvable:$true] %s23_s20 }
   0xb   :  { %p187_p3 = scmp.ne.s32.totalorder %s326_s1, %s186_s23  ;;  %p190_p4 = scmp.lt.u32.totalorder %s186_s23, %s326_s1 }
   0xd   :  { %p192_p5 = pnand %p190_p4, %p187_p3 }
   0xf   :  { %195 = shalt.err (!%p192_p5)
}
  0x10   :  { %s196_s28 = scalar_lea.vmem %s24_s20, 768  ;;  %p201_p7 = scmp.lt.s32.totalorder %s24_s20, %s24_s20 }
  0x11   :  { %p197_p6 = scmp.ne.s32.totalorder %s24_s20, %s196_s28  ;;  %p202_p8 = scmp.lt.s32.totalorder %s196_s28, %s196_s28 }
  0x13   :  { %p203_p9 = por %p202_p8, %p201_p7 }
  0x15   :  { %p204_p10 = pnand %p203_p9, %p197_p6 }
  0x17   :  { %207 = shalt.err (!%p204_p10)
}
  0x18   :  { %s238_s0 = smov 128   ;;  %s239_s29 = smov 8  }
  0x19   :  { %29 = dma.hbm_to_vmem [thread:$0]  %s326_s1, 768, %s24_s20, [#allocation3], %s238_s0, %s238_s0, %s239_s29  }
  0x1a   :  { %230 = dma.done.wait [#allocation5], 16  }
  0x1b   :  { %231 = vsyncadd [#allocation5], 4294967280 }
  0x1c   :  { %232 = dma.done.wait [#allocation3], 768  }
  0x1d   :  { %233 = vsyncadd [#allocation3], 4294966528 }
  0x1e   :  { %36 = sfence }
  0x1f   :  { %s42_s4 = sld [smem:[#allocation2]]  ;;  %s154_s5 = sld [smem:[#allocation2 + $0x1]]  ;;  %v106_v0 = vld [vmem:[#allocation6 + $0x18] sm:$0xff]  ;;  %v108_v1 = vld [vmem:[#allocation6 + $0x20] sm:$0xff]  ;;  %v110_v2 = vld [vmem:[#allocation6 + $0x28] sm:$0xff] }
  0x20   :  { %s155_s6 = sld [smem:[#allocation2 + $0x2]]  ;;  %s283_s7 = sld [smem:[#allocation2 + $0x3]]  ;;  %v111_v3 = vmul.f32 %v106_v0, %v106_v0  ;;  %v112_v4 = vmul.f32 %v108_v1, %v108_v1  ;;  %v114_v5 = vmul.f32 %v110_v2, %v110_v2  ;;  %v37_v6 = vld [vmem:[#allocation6] sm:$0xff]  ;;  %v39_v8 = vld [vmem:[#allocation6 + $0x8] sm:$0xff]  ;;  %v41_v9 = vld [vmem:[#allocation6 + $0x10] sm:$0xff] }
  0x21   :  { %s157_s8 = sld [smem:[#allocation2 + $0x4]]  ;;  %s158_s9 = sld [smem:[#allocation2 + $0x5]] }
  0x22   :  { %s159_s10 = sld [smem:[#allocation2 + $0x6]]  ;;  %s285_s1 = sld [smem:[#allocation2 + $0x7]]  ;;  %v113_v7 = vadd.f32 %v112_v4, %v111_v3 }
  0x23   :  { %s287_s11 = sld [smem:[#allocation2 + $0x8]]  ;;  %s162_s12 = sld [smem:[#allocation2 + $0x9]] }
  0x24   :  { %s163_s13 = sld [smem:[#allocation2 + $0xa]]  ;;  %s289_s14 = sld [smem:[#allocation2 + $0xb]]  ;;  %v115_v11 = vadd.f32 %v114_v5, %v113_v7 }
  0x25   :  { %v43_v10 = vstv %s42_s4  ;;  %s291_s15 = sld [smem:[#allocation2 + $0xc]]  ;;  %v46_v13 = vstv %s154_s5  ;;  %s293_s16 = sld [smem:[#allocation2 + $0xd]] }
  0x26   :  { %v44_v12 = vmul.f32 %v43_v10, %v37_v6  ;;  %v50_v14 = vstv %s155_s6  ;;  %s295_s17 = sld [smem:[#allocation2 + $0xe]]  ;;  %v47_v15 = vmul.f32 %v46_v13, %v39_v8  ;;  %v54_v18 = vstv %s283_s7  ;;  %s298_s18 = sld [smem:[#allocation2 + $0xf]] }
  0x27   :  { %v51_v16 = vmul.f32 %v50_v14, %v41_v9  ;;  %v58_v17 = vstv %s157_s8  ;;  %v61_v20 = vstv %s158_s9  ;;  %vm116_vm0 = vcmp.gt.f32.partialorder %v115_v11, 1e-20  ;;  %s240_s19 = smov [#allocation7]  }
  0x28   :  { %v59_v19 = vmul.f32 %v58_v17, %v37_v6  ;;  %v65_v21 = vstv %s159_s10  ;;  %v48_v22 = vadd.f32 %v47_v15, %v44_v12  ;;  %v62_v23 = vmul.f32 %v61_v20, %v39_v8  ;;  %s141_s20 = sshll.u32 %s240_s19, 4  ;;  %s142_s20 = int_to_ptr.vmem [resolvable:$true] %s141_s20 }
  0x29   :  { %v66_v24 = vmul.f32 %v65_v21, %v41_v9  ;;  %v69_v25 = vstv %s285_s1  ;;  %v74_v26 = vstv %s287_s11  ;;  %v77_v27 = vstv %s162_s12  ;;  %s208_s21 = scalar_lea.vmem %s142_s20, 896  ;;  %p213_p12 = scmp.lt.s32.totalorder %s142_s20, %s142_s20 }
  0x2a   :  { %v81_v28 = vstv %s163_s13  ;;  %v52_v29 = vadd.f32 %v51_v16, %v48_v22  ;;  %v63_v30 = vadd.f32 %v62_v23, %v59_v19  ;;  %v75_v31 = vmul.f32 %v74_v26, %v37_v6  ;;  %p209_p11 = scmp.ne.s32.totalorder %s142_s20, %s208_s21  ;;  %p214_p13 = scmp.lt.s32.totalorder %s208_s21, %s208_s21 }
  0x2b   :  { %v78_v32 = vmul.f32 %v77_v27, %v39_v8  ;;  %v82_v33 = vmul.f32 %v81_v28, %v41_v9  ;;  %v90_v34 = vstv %s291_s15  ;;  %v93_v35 = vstv %s293_s16 }
  0x2c   :  { %v117_v36 = vsel %vm116_vm0, %v106_v0, 0.0  ;;  %v55_v37 = vadd.f32 %v54_v18, %v52_v29  ;;  %v67_v38 = vadd.f32 %v66_v24, %v63_v30  ;;  %v91_v40 = vmul.f32 %v90_v34, %v37_v6  ;;  %p215_p0 = por %p214_p13, %p213_p12 }
  0x2d   :  { %v79_v39 = vadd.f32 %v78_v32, %v75_v31  ;;  %v85_v41 = vstv %s289_s14  ;;  %v94_v42 = vmul.f32 %v93_v35, %v39_v8  ;;  %v97_v43 = vstv %s295_s17 }
  0x2e   :  { %v118_v44 = vsel %vm116_vm0, %v108_v1, 0.0  ;;  %56 = vst [vmem:[#allocation7] sm:$0xff] %v55_v37  ;;  %v70_v45 = vadd.f32 %v69_v25, %v67_v38  ;;  %v98_v47 = vmul.f32 %v97_v43, %v41_v9  ;;  %v119_v48 = vsel %vm116_vm0, %v110_v2, 1.0  ;;  %p216_p1 = pnand %p215_p0, %p209_p11 }
  0x2f   :  { %v83_v46 = vadd.f32 %v82_v33, %v79_v39  ;;  %v95_v49 = vadd.f32 %v94_v42, %v91_v40  ;;  %v120_v50 = vmul.f32 %v117_v36, %v117_v36  ;;  %v121_v51 = vmul.f32 %v118_v44, %v118_v44 }
  0x30   :  { %v123_v52 = vmul.f32 %v119_v48, %v119_v48  ;;  %72 = vst [vmem:[#allocation7 + $0x8] sm:$0xff] %v70_v45  ;;  %v101_v54 = vstv %s298_s18 }
  0x31   :  { %v86_v53 = vadd.f32 %v85_v41, %v83_v46  ;;  %v99_v55 = vadd.f32 %v98_v47, %v95_v49  ;;  %v122_v56 = vadd.f32 %v121_v51, %v120_v50 }
  0x33   :  { %88 = vst [vmem:[#allocation7 + $0x10] sm:$0xff] %v86_v53  ;;  %v102_v57 = vadd.f32 %v101_v54, %v99_v55  ;;  %v124_v58 = vadd.f32 %v123_v52, %v122_v56 }
  0x35   :  { %104 = vst [vmem:[#allocation7 + $0x18] sm:$0xff] %v102_v57  ;;  %v125_v59 = vmax.f32 %v124_v58, 1e-20 }
  0x37   :  { %174 = vrsqrt.f32 %v125_v59 }
  0x41   :  { %v175_v60 = vpop.eup %174 }
  0x42   :  { %v127_v61 = vmul.f32 %v175_v60, %v117_v36  ;;  %v130_v62 = vmul.f32 %v175_v60, %v118_v44  ;;  %v133_v63 = vmul.f32 %v175_v60, %v119_v48 }
  0x44   :  { %129 = vst [vmem:[#allocation7 + $0x20] sm:$0xff] %v127_v61  ;;  %132 = vst [vmem:[#allocation7 + $0x28] sm:$0xff] %v130_v62 }
  0x45   :  { %135 = vst [vmem:[#allocation7 + $0x30] sm:$0xff] %v133_v63 }
  0x46   :  { %219 = shalt.err (!%p216_p1)
}
  0x47   :  { %s220_s24 = scalar_lea.hbm %s327_s2, 896 }
  0x48   :  { %p221_p2 = scmp.ne.s32.totalorder %s327_s2, %s220_s24  ;;  %p224_p3 = scmp.lt.u32.totalorder %s220_s24, %s327_s2 }
  0x4a   :  { %p226_p4 = pnand %p224_p3, %p221_p2 }
  0x4c   :  { %229 = shalt.err (!%p226_p4)
}
  0x4d   :  { %147 = dma.vmem_to_hbm [thread:$0]  %s142_s20, 896, %s327_s2, [#allocation4], %s238_s0, %s238_s0, %s239_s29  }
  0x4e   :  { %234 = dma.done.wait [#allocation4], 896  }
  0x4f   :  { %235 = vsyncadd [#allocation4], 4294966400 }
  0x50   :  { %151 = vsyncpa [#allocation3], 1 }
  0x51   :  { %152 = vsyncpa [#allocation4], 1 }
  0x52   :  { %153 = vsyncpa [#allocation5], 1 }

</bundles_post_ra>
